<compile_context>
chip_gen: v6e
topology: v6e:2x2x1
jax: 0.10.0
libtpu: 0.0.40
codegen_flags: <defaults>
</compile_context>

<pallas_src>
import math
from typing import NamedTuple

import jax
import jax.numpy as jnp
from jax.experimental import pallas as pl
from jax.experimental.pallas import tpu as pltpu

# ----------------------------------------------------------------------------
# Tunables
# ----------------------------------------------------------------------------
_BLOCK_DIAG_MAX_C = 64            # block-diagonal-A path only for small graphs
_SINGLE_BLOCK_ROW_CAP = 512       # whole batch in one grid step if rows <= this
_TARGET_MXU_ROWS = 256            # fill MXU M (256 on v6e/v7x; >=128 on v5e)
_VMEM_LIMIT_BYTES = 48 * 1024 * 1024   # > 16/32 MiB scoped defaults, < v7x 64 MiB
_GRID_VMEM_BUDGET = 40 * 1024 * 1024   # budget for double-buffered per-step tiles
_WEIGHT_BUFFERING = pl.Buffered(1)     # weights are grid-invariant: 1 buffer only


class DCRNNWeights(NamedTuple):
    """Fused / bf16 gate weights.  Build ONCE per sequence, not per timestep."""
    w_big: jax.Array   # [in_dim + H, 3H] = [[Wz_x|Wr_x|Wh_x], [Wz_h|Wr_h|0]]
    w_hh: jax.Array    # [H, H]           = Wh_h


def prepare_dcrnn_weights(params):
    """Hoisted weight prep (concat + bf16 cast) -- call once per sequence."""
    H = params["Wz_h"].shape[0]
    wx = jnp.concatenate([params["Wz_x"], params["Wr_x"], params["Wh_x"]], axis=1)
    wh = jnp.concatenate(
        [params["Wz_h"], params["Wr_h"], jnp.zeros((H, H), params["Wz_h"].dtype)],
        axis=1)
    w_big = jnp.concatenate([wx, wh], axis=0).astype(jnp.bfloat16)
    return DCRNNWeights(w_big=w_big, w_hh=params["Wh_h"].astype(jnp.bfloat16))


# ----------------------------------------------------------------------------
# Kernels
# ----------------------------------------------------------------------------
def _dcrnn_rows_kernel(xh_ref, h_ref, a_ref, wbig_ref, whh_ref, out_ref):
    """Small-graph path.  R = TB*C flattened (batch, node) rows per grid step.

    xh_ref  : [R, in+H]   bf16  ([x_t | h_prev])
    h_ref   : [R, H]      f32
    a_ref   : [1, R, R]   bf16  block-diagonal adjacency for these rows
    wbig_ref: [in+H, 3H]  bf16
    whh_ref : [H, H]      bf16
    out_ref : [R, H]      f32
    """
    H = h_ref.shape[-1]
    h = h_ref[...]
    A = a_ref[0]
    # One full-width A-matmul covers A@x and A@h; one wide weight matmul covers
    # all three gates' x/h contributions (gh for the candidate path is 0).
    axh = jnp.dot(A, xh_ref[...], preferred_element_type=jnp.float32)
    g = jnp.dot(axh.astype(jnp.bfloat16), wbig_ref[...],
                preferred_element_type=jnp.float32)               # [R, 3H]
    z = jax.nn.sigmoid(g[:, :H])
    r = jax.nn.sigmoid(g[:, H:2 * H])
    rh = (r * h).astype(jnp.bfloat16)          # dropout(p=0.0) is the identity
    arh = jnp.dot(A, rh, preferred_element_type=jnp.float32)
    ch = jnp.dot(arh.astype(jnp.bfloat16), whh_ref[...],
                 preferred_element_type=jnp.float32)
    h_tilde = jnp.tanh(g[:, 2 * H:] + ch)
    # TODO(synk): if the bundle shows masked vst on the H(<128)-lane output,
    # present a lane-dense [TB, C*H] slab instead (costs a sublane->lane relayout).
    out_ref[...] = ((1.0 - z) * h + z * h_tilde).astype(out_ref.dtype)


def _dcrnn_batched_kernel(xh_ref, h_ref, a_ref, wbig_ref, whh_ref, out_ref):
    """Large-graph path: TB batch elements per step, A kept 3-D (batched einsum).

    xh_ref  : [TB, C, in+H] bf16
    h_ref   : [TB, C, H]    f32
    a_ref   : [TB, C, C]    bf16
    wbig_ref: [in+H, 3H]    bf16
    whh_ref : [H, H]        bf16
    out_ref : [TB, C, H]    f32
    """
    TB, C, H = h_ref.shape
    h = h_ref[...]
    A = a_ref[...]
    axh = jnp.einsum("bij,bjk->bik", A, xh_ref[...],
                     preferred_element_type=jnp.float32)          # [TB, C, in+H]
    g = jnp.dot(axh.reshape(TB * C, -1).astype(jnp.bfloat16), wbig_ref[...],
                preferred_element_type=jnp.float32)               # [TB*C, 3H]
    h2 = h.reshape(TB * C, H)
    z = jax.nn.sigmoid(g[:, :H])
    r = jax.nn.sigmoid(g[:, H:2 * H])
    rh = (r * h2).reshape(TB, C, H).astype(jnp.bfloat16)
    arh = jnp.einsum("bij,bjk->bik", A, rh, preferred_element_type=jnp.float32)
    ch = jnp.dot(arh.reshape(TB * C, H).astype(jnp.bfloat16), whh_ref[...],
                 preferred_element_type=jnp.float32)
    h_tilde = jnp.tanh(g[:, 2 * H:] + ch)
    out_ref[...] = ((1.0 - z) * h2 + z * h_tilde).reshape(TB, C, H).astype(out_ref.dtype)


# ----------------------------------------------------------------------------
# Wrappers
# ----------------------------------------------------------------------------
def _pick_block_batch(B, C, in_dim, H):
    """Batch elements per step for the batched path: fill the MXU M dimension
    (~_TARGET_MXU_ROWS rows) subject to a VMEM budget for the double-buffered
    per-step tiles (A is by far the largest)."""
    tb = min(B, max(1, -(-_TARGET_MXU_ROWS // C)))      # ceil(target / C), <= B

    def tile_bytes(t):
        a = t * C * C * 2                    # A        (bf16)
        xh = t * C * (in_dim + H) * 2        # [x|h]    (bf16)
        hp = t * C * H * 4                   # h_prev   (f32)
        o = t * C * H * 4                    # out      (f32)
        return 2 * (a + xh + hp + o)         # double-buffered

    while tb > 1 and tile_bytes(tb) > _GRID_VMEM_BUDGET:
        tb -= 1
    return tb


def _forward_block_diag(xh, h_prev, A_t, w_big, w_hh):
    """Small graphs: block-diagonal A, everything flattened to [rows, .]."""
    B, C, H = h_prev.shape
    Din = xh.shape[-1]
    if B * C <= _SINGLE_BLOCK_ROW_CAP:
        TB = B                                        # one big step
    else:
        TB = min(B, max(1, _TARGET_MXU_ROWS // C))    # ~256 rows per step
    nb = pl.cdiv(B, TB)
    B_pad = nb * TB
    if B_pad != B:                                    # prime / awkward B: zero-pad
        pad = ((0, B_pad - B), (0, 0), (0, 0))
        xh = jnp.pad(xh, pad)
        h_prev = jnp.pad(h_prev, pad)
        A_t = jnp.pad(A_t, pad)
    R = TB * C
    # Block-diagonal adjacency for each group of TB batch elements: one dense
    # [R, R] x [R, Din] matmul per step instead of TB tiny [C, C] einsums.
    A_grp = A_t.reshape(nb, TB, C, C)
    A_bd = jnp.einsum("giab,ij->giajb", A_grp, jnp.eye(TB, dtype=A_t.dtype))
    A_bd = A_bd.reshape(nb, R, R).astype(jnp.bfloat16)
    xh2 = xh.reshape(B_pad * C, Din)
    h2 = h_prev.reshape(B_pad * C, H)

    out = pl.pallas_call(
        _dcrnn_rows_kernel,
        out_shape=jax.ShapeDtypeStruct((B_pad * C, H), h_prev.dtype),
        grid_spec=pltpu.PrefetchScalarGridSpec(
            num_scalar_prefetch=0,
            grid=(nb,),
            in_specs=[
                pl.BlockSpec((R, Din), lambda g: (g, 0)),
                pl.BlockSpec((R, H), lambda g: (g, 0)),
                pl.BlockSpec((1, R, R), lambda g: (g, 0, 0)),
                pl.BlockSpec((Din, 3 * H), lambda g: (0, 0),
                             pipeline_mode=_WEIGHT_BUFFERING),
                pl.BlockSpec((H, H), lambda g: (0, 0),
                             pipeline_mode=_WEIGHT_BUFFERING),
            ],
            out_specs=pl.BlockSpec((R, H), lambda g: (g, 0)),
        ),
        compiler_params=pltpu.CompilerParams(
            dimension_semantics=("parallel",),
            vmem_limit_bytes=_VMEM_LIMIT_BYTES),
    )(xh2, h2, A_bd, w_big, w_hh)
    return out.reshape(B_pad, C, H)[:B]


def _forward_batched(xh, h_prev, A_t, w_big, w_hh):
    """Large graphs: batched einsum over TB elements per step (3-D A blocks)."""
    B, C, H = h_prev.shape
    Din = xh.shape[-1]
    TB = _pick_block_batch(B, C, Din - H, H)
    nb = pl.cdiv(B, TB)   # ragged last block OK: rows are independent, OOB
                          # output rows are masked by Pallas.
    # TODO(synk): for very large graphs (C ~ 1-2K nodes) add a node-dim
    # 'arbitrary' grid axis + f32 accumulator so the A tile fits v7x's 64 MiB.
    return pl.pallas_call(
        _dcrnn_batched_kernel,
        out_shape=jax.ShapeDtypeStruct((B, C, H), h_prev.dtype),
        grid_spec=pltpu.PrefetchScalarGridSpec(
            num_scalar_prefetch=0,
            grid=(nb,),
            in_specs=[
                pl.BlockSpec((TB, C, Din), lambda b: (b, 0, 0)),
                pl.BlockSpec((TB, C, H), lambda b: (b, 0, 0)),
                pl.BlockSpec((TB, C, C), lambda b: (b, 0, 0)),
                pl.BlockSpec((Din, 3 * H), lambda b: (0, 0),
                             pipeline_mode=_WEIGHT_BUFFERING),
                pl.BlockSpec((H, H), lambda b: (0, 0),
                             pipeline_mode=_WEIGHT_BUFFERING),
            ],
            out_specs=pl.BlockSpec((TB, C, H), lambda b: (b, 0, 0)),
        ),
        compiler_params=pltpu.CompilerParams(
            dimension_semantics=("parallel",),
            vmem_limit_bytes=_VMEM_LIMIT_BYTES),
    )(xh, h_prev, A_t, w_big, w_hh)


def dcrnn_cell_batch(x_t, h_prev, A_t, weights):
    """Pallas forward of DCRNNCellBatch.

    x_t:    [B, C, in_dim]  f32
    h_prev: [B, C, hidden]  f32
    A_t:    [B, C, C]       f32
    weights: DCRNNWeights from prepare_dcrnn_weights(params), or a raw params
             dict (for recurrent use, prepare once per sequence, not per step).
    returns h_t: [B, C, hidden] f32
    """
    if isinstance(weights, dict):
        weights = prepare_dcrnn_weights(weights)
    B, C, in_dim = x_t.shape
    H = h_prev.shape[-1]
    assert weights.w_big.shape == (in_dim + H, 3 * H)

    # A @ (X @ W) == (A @ X) @ W  and  A @ [x|h] == [A@x | A@h], so one fused
    # A-matmul feeds one wide weight matmul covering all three gates.
    # (TODO(synk): for very long recurrences, consider keeping the A-matmul
    # outputs in f32 before the weight matmuls to reduce compounding bf16 error.)
    xh = jnp.concatenate([x_t, h_prev], axis=-1).astype(jnp.bfloat16)

    use_block_diag = (C <= _BLOCK_DIAG_MAX_C
                      and (B * C <= _SINGLE_BLOCK_ROW_CAP or C % 8 == 0))
    if use_block_diag:
        return _forward_block_diag(xh, h_prev, A_t, weights.w_big, weights.w_hh)
    return _forward_batched(xh, h_prev, A_t.astype(jnp.bfloat16),
                            weights.w_big, weights.w_hh)


# ----------------------------------------------------------------------------
# Parameter init (xavier_uniform, deterministic) and pure-JAX reference.
# ----------------------------------------------------------------------------
def xavier_uniform(key, shape, dtype=jnp.float32):
    fan_in, fan_out = shape
    bound = math.sqrt(6.0 / (fan_in + fan_out))
    return jax.random.uniform(key, shape, dtype, minval=-bound, maxval=bound)


def init_params(key, in_dim, hidden_dim):
    names = ["Wz_x", "Wz_h", "Wr_x", "Wr_h", "Wh_x", "Wh_h"]
    keys = jax.random.split(key, len(names))
    params = {}
    for n, k in zip(names, keys):
        d0 = in_dim if n.endswith("_x") else hidden_dim
        params[n] = xavier_uniform(k, (d0, hidden_dim))
    return params


def dcrnn_cell_batch_ref(x_t, h_prev, A_t, p):
    gconv = lambda X, W: jnp.einsum("bcn,bnd->bcd", A_t, jnp.einsum("bci,id->bcd", X, W))
    z = jax.nn.sigmoid(gconv(x_t, p["Wz_x"]) + gconv(h_prev, p["Wz_h"]))
    r = jax.nn.sigmoid(gconv(x_t, p["Wr_x"]) + gconv(h_prev, p["Wr_h"]))
    h_tilde = jnp.tanh(gconv(x_t, p["Wh_x"]) + gconv(r * h_prev, p["Wh_h"]))
    return (1.0 - z) * h_prev + z * h_tilde


def _make_inputs(key, B, C, in_dim, hidden):
    k_x, k_h, k_a = jax.random.split(key, 3)
    x_t = jax.random.normal(k_x, (B, C, in_dim), jnp.float32)
    h_prev = jax.random.normal(k_h, (B, C, hidden), jnp.float32)
    A_raw = jax.nn.relu(jax.random.normal(k_a, (B, C, C), jnp.float32)) + 0.1
    A_t = A_raw / jnp.sum(A_raw, axis=-1, keepdims=True)
    return x_t, h_prev, A_t


if __name__ == "__main__":
    in_dim, hidden = 8, 32
    key = jax.random.PRNGKey(0)
    k_p, k_small, k_big = jax.random.split(key, 3)

    params = init_params(k_p, in_dim, hidden)
    weights = prepare_dcrnn_weights(params)   # hoisted: once per sequence

    # 1) Small graph (B=2, C=16) -> block-diagonal-A path, single grid step.
    x_t, h_prev, A_t = _make_inputs(k_small, 2, 16, in_dim, hidden)
    h_t = jax.block_until_ready(dcrnn_cell_batch(x_t, h_prev, A_t, weights))
    h_ref = dcrnn_cell_batch_ref(x_t, h_prev, A_t, params)
    assert h_t.shape == (2, 16, hidden)
    assert jnp.allclose(h_t, h_ref, atol=3e-2, rtol=3e-2), "block-diag path mismatch"

    # 2) Larger graph (B=4, C=128) -> batched (3-D A) path, 2-step parallel grid.
    x2, hp2, A2 = _make_inputs(k_big, 4, 128, in_dim, hidden)
    o2 = jax.block_until_ready(dcrnn_cell_batch(x2, hp2, A2, weights))
    o2_ref = dcrnn_cell_batch_ref(x2, hp2, A2, params)
    assert o2.shape == (4, 128, hidden)
    assert jnp.allclose(o2, o2_ref, atol=3e-2, rtol=3e-2), "batched path mismatch"

    print("KERNEL_OK")
</pallas_src>

<mosaic_0001>
module attributes {stable_mosaic.version = 11 : i64} {
  func.func @_dcrnn_rows_kernel(%arg0: i32, %arg1: memref<32x40xbf16, #tpu.memory_space<vmem>>, %arg2: memref<32x32xf32, #tpu.memory_space<vmem>>, %arg3: memref<1x32x32xbf16, #tpu.memory_space<vmem>>, %arg4: memref<40x96xbf16, #tpu.memory_space<vmem>>, %arg5: memref<32x32xbf16, #tpu.memory_space<vmem>>, %arg6: memref<32x32xf32, #tpu.memory_space<vmem>>) attributes {dimension_semantics = [#tpu.dimension_semantics<parallel>], iteration_bounds = array<i64: 1>, scalar_prefetch = 0 : i64, scratch_operands = 0 : i64, tpu.core_type = #tpu.core_type<tc>, window_params = [{transform_indices = @transform_0, window_bounds = array<i64: 32, 40>}, {transform_indices = @transform_1, window_bounds = array<i64: 32, 32>}, {transform_indices = @transform_2, window_bounds = array<i64: 1, 32, 32>}, {pipeline_mode = #tpu.pipeline_mode<synchronous>, transform_indices = @transform_3, window_bounds = array<i64: 40, 96>}, {pipeline_mode = #tpu.pipeline_mode<synchronous>, transform_indices = @transform_4, window_bounds = array<i64: 32, 32>}, {transform_indices = @transform_5, window_bounds = array<i64: 32, 32>}]} {
    %c0 = arith.constant 0 : index
    %c0_0 = arith.constant 0 : index
    %0 = vector.load %arg2[%c0, %c0_0] : memref<32x32xf32, #tpu.memory_space<vmem>>, vector<32x32xf32>
    %c0_1 = arith.constant 0 : index
    %c0_2 = arith.constant 0 : index
    %c0_3 = arith.constant 0 : index
    %1 = vector.load %arg3[%c0_1, %c0_2, %c0_3] : memref<1x32x32xbf16, #tpu.memory_space<vmem>>, vector<1x32x32xbf16>
    %2 = vector.shape_cast %1 : vector<1x32x32xbf16> to vector<32x32xbf16>
    %c0_4 = arith.constant 0 : index
    %c0_5 = arith.constant 0 : index
    %3 = vector.load %arg1[%c0_4, %c0_5] : memref<32x40xbf16, #tpu.memory_space<vmem>>, vector<32x40xbf16>
    %cst = arith.constant dense<0.000000e+00> : vector<32x40xf32>
    %4 = tpu.matmul %2, %3, %cst {dimension_numbers = #tpu.dot_dimension_numbers<[1], [0], [0], [1], [0, 0, 1, 1], [], []>} : vector<32x32xbf16>, vector<32x40xbf16>, vector<32x40xf32> -> vector<32x40xf32>
    %5 = arith.truncf %4 : vector<32x40xf32> to vector<32x40xbf16>
    %c0_6 = arith.constant 0 : index
    %c0_7 = arith.constant 0 : index
    %6 = vector.load %arg4[%c0_6, %c0_7] : memref<40x96xbf16, #tpu.memory_space<vmem>>, vector<40x96xbf16>
    %cst_8 = arith.constant dense<0.000000e+00> : vector<32x96xf32>
    %7 = tpu.matmul %5, %6, %cst_8 {dimension_numbers = #tpu.dot_dimension_numbers<[1], [0], [0], [1], [0, 0, 1, 1], [], []>} : vector<32x40xbf16>, vector<40x96xbf16>, vector<32x96xf32> -> vector<32x96xf32>
    %8 = vector.extract_strided_slice %7 {offsets = [0, 0], sizes = [32, 32], strides = [1, 1]} : vector<32x96xf32> to vector<32x32xf32>
    %9 = arith.negf %8 : vector<32x32xf32>
    %10 = math.exp %9 : vector<32x32xf32>
    %cst_9 = arith.constant 1.000000e+00 : f32
    %11 = vector.broadcast %cst_9 : f32 to vector<32x32xf32>
    %12 = arith.addf %11, %10 : vector<32x32xf32>
    %13 = arith.divf %11, %12 : vector<32x32xf32>
    %14 = vector.extract_strided_slice %7 {offsets = [0, 32], sizes = [32, 32], strides = [1, 1]} : vector<32x96xf32> to vector<32x32xf32>
    %15 = arith.negf %14 : vector<32x32xf32>
    %16 = math.exp %15 : vector<32x32xf32>
    %cst_10 = arith.constant 1.000000e+00 : f32
    %17 = vector.broadcast %cst_10 : f32 to vector<32x32xf32>
    %18 = arith.addf %17, %16 : vector<32x32xf32>
    %19 = arith.divf %17, %18 : vector<32x32xf32>
    %20 = arith.mulf %19, %0 : vector<32x32xf32>
    %21 = arith.truncf %20 : vector<32x32xf32> to vector<32x32xbf16>
    %cst_11 = arith.constant dense<0.000000e+00> : vector<32x32xf32>
    %22 = tpu.matmul %2, %21, %cst_11 {dimension_numbers = #tpu.dot_dimension_numbers<[1], [0], [0], [1], [0, 0, 1, 1], [], []>} : vector<32x32xbf16>, vector<32x32xbf16>, vector<32x32xf32> -> vector<32x32xf32>
    %23 = arith.truncf %22 : vector<32x32xf32> to vector<32x32xbf16>
    %c0_12 = arith.constant 0 : index
    %c0_13 = arith.constant 0 : index
    %24 = vector.load %arg5[%c0_12, %c0_13] : memref<32x32xbf16, #tpu.memory_space<vmem>>, vector<32x32xbf16>
    %cst_14 = arith.constant dense<0.000000e+00> : vector<32x32xf32>
    %25 = tpu.matmul %23, %24, %cst_14 {dimension_numbers = #tpu.dot_dimension_numbers<[1], [0], [0], [1], [0, 0, 1, 1], [], []>} : vector<32x32xbf16>, vector<32x32xbf16>, vector<32x32xf32> -> vector<32x32xf32>
    %26 = vector.extract_strided_slice %7 {offsets = [0, 64], sizes = [32, 32], strides = [1, 1]} : vector<32x96xf32> to vector<32x32xf32>
    %27 = arith.addf %26, %25 : vector<32x32xf32>
    %28 = math.tanh %27 : vector<32x32xf32>
    %cst_15 = arith.constant 1.000000e+00 : f32
    %29 = vector.broadcast %cst_15 : f32 to vector<32x32xf32>
    %30 = arith.subf %29, %13 : vector<32x32xf32>
    %31 = arith.mulf %30, %0 : vector<32x32xf32>
    %32 = arith.mulf %13, %28 : vector<32x32xf32>
    %33 = arith.addf %31, %32 : vector<32x32xf32>
    %c0_16 = arith.constant 0 : index
    %c0_17 = arith.constant 0 : index
    %34 = vector.load %arg6[%c0_16, %c0_17] : memref<32x32xf32, #tpu.memory_space<vmem>>, vector<32x32xf32>
    tpu.vector_store %arg6[%c0_16, %c0_17], %33 {strides = array<i32>} : memref<32x32xf32, #tpu.memory_space<vmem>>, vector<32x32xf32>,
    return
  }
  func.func @transform_0(%arg0: i32) -> (i32, i32) {
    %c0_i32 = arith.constant 0 : i32
    %c0_i32_0 = arith.constant 0 : i32
    return %arg0, %c0_i32 : i32, i32
  }
  func.func @transform_1(%arg0: i32) -> (i32, i32) {
    %c0_i32 = arith.constant 0 : i32
    %c0_i32_0 = arith.constant 0 : i32
    return %arg0, %c0_i32 : i32, i32
  }
  func.func @transform_2(%arg0: i32) -> (i32, i32, i32) {
    %c0_i32 = arith.constant 0 : i32
    %c0_i32_0 = arith.constant 0 : i32
    %c0_i32_1 = arith.constant 0 : i32
    return %arg0, %c0_i32, %c0_i32_0 : i32, i32, i32
  }
  func.func @transform_3(%arg0: i32) -> (i32, i32) {
    %c0_i32 = arith.constant 0 : i32
    %c0_i32_0 = arith.constant 0 : i32
    %c0_i32_1 = arith.constant 0 : i32
    return %c0_i32, %c0_i32_0 : i32, i32
  }
  func.func @transform_4(%arg0: i32) -> (i32, i32) {
    %c0_i32 = arith.constant 0 : i32
    %c0_i32_0 = arith.constant 0 : i32
    %c0_i32_1 = arith.constant 0 : i32
    return %c0_i32, %c0_i32_0 : i32, i32
  }
  func.func @transform_5(%arg0: i32) -> (i32, i32) {
    %c0_i32 = arith.constant 0 : i32
    %c0_i32_0 = arith.constant 0 : i32
    return %arg0, %c0_i32 : i32, i32
  }
}

</mosaic_0001>

<bundles_post_ra>
// kernel: tpu_custom_call.1
= control target key start
LH: loop header
LB: loop body
LE: loop exit
PB: predicated region body
PF: predicated region fallthrough
CT: control target
= control target key end

     0   :  { %10 = vsyncpa [#allocation3], 0  ;;  %s915_s0 = inlined_call_operand.hbm [shape: bf16[32,40], index: 0, kind: input, shape index: {}]   ;;  %s916_s1 = inlined_call_operand.hbm [shape: f32[32,32], index: 1, kind: input, shape index: {}]   ;;  %s917_s2 = inlined_call_operand.hbm [shape: bf16[1,32,32], index: 2, kind: input, shape index: {}]   ;;  %s918_s3 = inlined_call_operand.hbm [shape: bf16[40,96], index: 3, kind: input, shape index: {}]   ;;  %s919_s4 = inlined_call_operand.hbm [shape: bf16[32,32], index: 4, kind: input, shape index: {}]   ;;  %s920_s5 = inlined_call_operand.hbm [shape: f32[32,32], index: 5, kind: output, shape index: {}]  }
   0x1   :  { %11 = vsyncpa [#allocation6], 0 }
   0x2   :  { %12 = vsyncpa [#allocation9], 0 }
   0x3   :  { %13 = vsyncpa [#allocation4], 0  ;;  %s763_s18 = smov [#allocation5]  }
   0x4   :  { %s31_s19 = sshll.u32 %s763_s18, 4  ;;  %s32_s19 = int_to_ptr.vmem [resolvable:$true] %s31_s19 }
   0x5   :  { %s643_s20 = scalar_lea.vmem %s32_s19, 512  ;;  %p648_p1 = scmp.lt.s32.totalorder %s32_s19, %s32_s19 }
   0x6   :  { %p644_p0 = scmp.ne.s32.totalorder %s32_s19, %s643_s20  ;;  %p649_p2 = scmp.lt.s32.totalorder %s643_s20, %s643_s20 }
   0x8   :  { %p650_p3 = por %p649_p2, %p648_p1 }
   0xa   :  { %p651_p4 = pnand %p650_p3, %p644_p0 }
   0xc   :  { %654 = shalt.err (!%p651_p4)
}
   0xd   :  { %s764_s21 = smov 128   ;;  %s765_s22 = smov 8  }
   0xe   :  { %37 = dma.hbm_to_vmem [thread:$0]  %s916_s1, 512, %s32_s19, [#allocation6], %s764_s21, %s764_s21, %s765_s22  }
   0xf   :  { %s766_s25 = smov [#allocation8]   ;;  %s767_s27 = smov [#allocation2]  }
  0x10   :  { %s55_s26 = sshll.u32 %s766_s25, 4  ;;  %s19_s28 = sshll.u32 %s767_s27, 4  ;;  %s56_s26 = int_to_ptr.vmem [resolvable:$true] %s55_s26  ;;  %s20_s28 = int_to_ptr.vmem [resolvable:$true] %s19_s28 }
  0x11   :  { %s663_s29 = scalar_lea.vmem %s56_s26, 320  ;;  %p668_p6 = scmp.lt.s32.totalorder %s56_s26, %s56_s26 }
  0x12   :  { %p664_p5 = scmp.ne.s32.totalorder %s56_s26, %s663_s29  ;;  %p669_p7 = scmp.lt.s32.totalorder %s663_s29, %s663_s29 }
  0x14   :  { %p670_p8 = por %p669_p7, %p668_p6 }
  0x16   :  { %p671_p9 = pnand %p670_p8, %p664_p5 }
  0x18   :  { %674 = shalt.err (!%p671_p9)
}
  0x19   :  { %s768_s30 = smov 64   ;;  %s769_s6 = smov 4  }
  0x1a   :  { %61 = dma.hbm_to_vmem [thread:$0]  %s918_s3, 320, %s56_s26, [#allocation9], %s768_s30, %s768_s30, %s769_s6  }
  0x1b   :  { %s683_s1 = scalar_lea.vmem %s20_s28, 256  ;;  %p688_p11 = scmp.lt.s32.totalorder %s20_s28, %s20_s28 }
  0x1c   :  { %p684_p10 = scmp.ne.s32.totalorder %s20_s28, %s683_s1  ;;  %p689_p12 = scmp.lt.s32.totalorder %s683_s1, %s683_s1 }
  0x1e   :  { %p690_p13 = por %p689_p12, %p688_p11 }
  0x20   :  { %p691_p0 = pnand %p690_p13, %p684_p10 }
  0x22   :  { %694 = shalt.err (!%p691_p0)
}
  0x23   :  { %25 = dma.hbm_to_vmem [thread:$0]  %s915_s0, 256, %s20_s28, [#allocation3], %s768_s30, %s768_s30, %s769_s6  }
  0x24   :  { %s770_s11 = smov [#allocation7]   ;;  %s771_s13 = smov [#allocation10]  }
  0x25   :  { %s43_s12 = sshll.u32 %s770_s11, 4  ;;  %s67_s3 = sshll.u32 %s771_s13, 4  ;;  %s44_s12 = int_to_ptr.vmem [resolvable:$true] %s43_s12  ;;  %s68_s3 = int_to_ptr.vmem [resolvable:$true] %s67_s3 }
  0x26   :  { %s703_s14 = scalar_lea.vmem %s44_s12, 256  ;;  %p708_p2 = scmp.lt.s32.totalorder %s44_s12, %s44_s12 }
  0x27   :  { %p704_p1 = scmp.ne.s32.totalorder %s44_s12, %s703_s14  ;;  %p709_p3 = scmp.lt.s32.totalorder %s703_s14, %s703_s14 }
  0x29   :  { %p710_p4 = por %p709_p3, %p708_p2 }
  0x2b   :  { %p711_p5 = pnand %p710_p4, %p704_p1 }
  0x2d   :  { %714 = shalt.err (!%p711_p5)
}
  0x2e   :  { %49 = dma.hbm_to_vmem [thread:$0]  %s917_s2, 256, %s44_s12, [#allocation6], %s768_s30, %s768_s30, %s769_s6  }
  0x2f   :  { %s723_s0 = scalar_lea.vmem %s68_s3, 256  ;;  %p728_p7 = scmp.lt.s32.totalorder %s68_s3, %s68_s3 }
  0x30   :  { %p724_p6 = scmp.ne.s32.totalorder %s68_s3, %s723_s0  ;;  %p729_p8 = scmp.lt.s32.totalorder %s723_s0, %s723_s0 }
  0x32   :  { %p730_p9 = por %p729_p8, %p728_p7 }
  0x34   :  { %p731_p10 = pnand %p730_p9, %p724_p6 }
  0x36   :  { %734 = shalt.err (!%p731_p10)
}
  0x37   :  { %73 = dma.hbm_to_vmem [thread:$0]  %s919_s4, 256, %s68_s3, [#allocation9], %s768_s30, %s768_s30, %s769_s6  }
  0x38   :  { %755 = dma.done.wait [#allocation3], 256  }
  0x39   :  { %756 = vsyncadd [#allocation3], 4294967040 }
  0x3a   :  { %757 = dma.done.wait [#allocation6], 768  }
  0x3b   :  { %758 = vsyncadd [#allocation6], 4294966528 }
  0x3c   :  { %759 = dma.done.wait [#allocation9], 576  }
  0x3d   :  { %760 = vsyncadd [#allocation9], 4294966720  ;;  %v602_v0 = vld [vmem:[#allocation2 + $0x8] sm:$0xff]   ;;  %v603_v1 = vld [vmem:[#allocation2] sm:$0xff]   ;;  %vm124_vm0 = vcmask 261120   ;;  %vm209_vm1 = vcmask 1043456  }
  0x3e   :  { %555 = vmatprep.subr.bf16.mxu0 %v602_v0  ;;  %v604_v2 = vld [vmem:[#allocation7] sm:$0xff]   ;;  %v836_v4 = vld [vmem:[#allocation7 + $0x8] sm:$0xff]   ;;  %v607_v6 = vld [vmem:[#allocation8 + $0x8] sm:$0xff]   ;;  %s772_s2 = smov 32   ;;  %vm202_vm2 = vcmask 326656   ;;  %s773_s4 = smov 96  }
  0x3f   :  { %556 = vmatpush3.bf16.msra.mxu0 %v602_v0  ;;  %559 = vmatprep.mubr.msk.bf16.mxu0 %vm124_vm0, %v604_v2  ;;  %v606_v3 = vld [vmem:[#allocation8 + $0x10] ss:$0 sps:$4 sm:$0xff]   ;;  %v608_v7 = vld [vmem:[#allocation8] sm:$0xff]   ;;  %v847_v10 = vld [vmem:[#allocation5 + $0x18] sm:$0xff]  ;;  %s774_s19 = smov [#allocation11]  }
  0x40   :  { %557 = vmatprep.subr.bf16.mxu0 %v603_v1  ;;  %589 = vmatprep.subr.msk.bf16.mxu1 %vm209_vm1, %v606_v3  ;;  %v211_v5 = vsel %vm209_vm1, %v606_v3, 0  ;;  %v841_v8 = vld [vmem:[#allocation5 + $0x10] sm:$0xff]  ;;  %v843_v9 = vld [vmem:[#allocation5] sm:$0xff]  ;;  %v849_v11 = vld [vmem:[#allocation5 + $0x8] sm:$0xff]  ;;  %s503_s20 = sshll.u32 %s774_s19, 4  ;;  %s504_s20 = int_to_ptr.vmem [resolvable:$true] %s503_s20 }
  0x41   :  { %564 = vmatpush3.bf16.msra.mxu1 %v211_v5  ;;  %294 = vrot.lane.b32.xlu0 %v841_v8, %s772_s2  ;;  %v609_v50 = vld [vmem:[#allocation10 + $0x8] sm:$0xff]   ;;  %v610_v51 = vld [vmem:[#allocation10] sm:$0xff]   ;;  %s735_s23 = scalar_lea.vmem %s504_s20, 512  ;;  %p740_p12 = scmp.lt.s32.totalorder %s504_s20, %s504_s20 }
  0x42   :  { %565 = vmatprep.subr.bf16.mxu1 %v607_v6  ;;  %290 = vrot.lane.b32.xlu1 %v843_v9, %s772_s2  ;;  %p736_p11 = scmp.ne.s32.totalorder %s504_s20, %s735_s23  ;;  %p741_p13 = scmp.lt.s32.totalorder %s735_s23, %s735_s23 }
  0x43   :  { %558 = vmatpush3.bf16.msra.mxu0 %v603_v1 }
  0x44   :  { %p742_p0 = por %p741_p13, %p740_p12 }
  0x45   :  { %566 = vmatpush3.bf16.msra.mxu1 %v607_v6  ;;  %296 = vrot.lane.b32.xlu0 %v847_v10, %s772_s2 }
  0x46   :  { %560 = vmatmul.mubr.msk.bf16.vlgmr.msra.gmra.mxu0 %vm124_vm0, %v836_v4  ;;  %567 = vmatprep.subr.bf16.mxu1 %v608_v7  ;;  %p743_p1 = pnand %p742_p0, %p736_p11 }
  0x47   :  { %577 = vmatprep.mubr.msk.bf16.mxu0 %vm124_vm0, %v604_v2  ;;  %292 = vrot.lane.b32.xlu1 %v849_v11, %s772_s2 }
  0x49   :  { %568 = vmatpush3.bf16.msra.mxu1 %v608_v7 }
  0x4a   :  { %581 = vmatprep.subr.bf16.mxu1 %v609_v50 }
  0xb3   :  { %v295_v34 = vpop.permute.xlu0 %294 }
  0xb4   :  { %v291_v35 = vpop.permute.xlu1 %290 }
  0xb7   :  { %v297_v37 = vpop.permute.xlu0 %296 }
  0xb9   :  { %v293_v40 = vpop.permute.xlu1 %292 }
 0x106   :  { %v561_v12 = vpop.f32.mrf.mxu0 }
 0x108   :  { %v165_v13 = vpop.f32.mrf.mxu0 }
 0x10a   :  { %v562_v14 = vpop.f32.mrf.mxu0 }
 0x10b   :  { %v181_v17 = vpack.c.bf16 %v562_v14, %v561_v12 }
 0x10c   :  { %v168_v15 = vpop.f32.mrf.mxu0 }
 0x10d   :  { %v180_v16 = vpack.c.bf16 %v168_v15, %v165_v13 }
 0x10f   :  { %569 = vmatprep.mubr.msk.bf16.mxu1 %vm202_vm2, %v180_v16 }
 0x110   :  { %570 = vmatmul.mubr.msk.bf16.vlgmr.msra.gmra.mxu1 %vm202_vm2, %v181_v17 }
 0x111   :  { %582 = vmatpush3.bf16.msra.mxu1 %v609_v50 }
 0x112   :  { %583 = vmatprep.subr.bf16.mxu1 %v610_v51 }
 0x115   :  { %584 = vmatpush3.bf16.msra.mxu1 %v610_v51 }
 0x1d0   :  { %v853_v18 = vpop.f32.mrf.mxu1 }
 0x1d1   :  { %v530_v19 = vmul.f32 -1.442695, %v853_v18 }
 0x1d2   :  { %v856_v20 = vpop.f32.mrf.mxu1 }
 0x1d3   :  { %611 = vpow2.f32 %v530_v19  ;;  %v528_v21 = vmul.f32 -1.442695, %v856_v20 }
 0x1d4   :  { %v859_v22 = vpop.f32.mrf.mxu1 }
 0x1d5   :  { %613 = vpow2.f32 %v528_v21  ;;  %v531_v23 = vmul.f32 -1.442695, %v859_v22 }
 0x1d6   :  { %v862_v24 = vpop.f32.mrf.mxu1 }
 0x1d7   :  { %615 = vpow2.f32 %v531_v23  ;;  %v529_v25 = vmul.f32 -1.442695, %v862_v24 }
 0x1d9   :  { %617 = vpow2.f32 %v529_v25 }
 0x1e0   :  { %v612_v26 = vpop.eup %611 }
 0x1e1   :  { %v276_v27 = vadd.f32 1.0, %v612_v26 }
 0x1e2   :  { %v614_v28 = vpop.eup %613 }
 0x1e3   :  { %v274_v29 = vadd.f32 1.0, %v614_v28  ;;  %619 = vrcp.f32 %v276_v27 }
 0x1e4   :  { %v616_v30 = vpop.eup %615 }
 0x1e5   :  { %v277_v31 = vadd.f32 1.0, %v616_v30  ;;  %621 = vrcp.f32 %v274_v29 }
 0x1e6   :  { %v618_v32 = vpop.eup %617 }
 0x1e7   :  { %623 = vrcp.f32 %v277_v31  ;;  %v275_v33 = vadd.f32 1.0, %v618_v32 }
 0x1e9   :  { %625 = vrcp.f32 %v275_v33 }
 0x1f0   :  { %v865_v36 = vpop.eup %619 }
 0x1f1   :  { %v304_v41 = vmul.f32 %v865_v36, %v295_v34 }
 0x1f2   :  { %v867_v38 = vpop.eup %621 }
 0x1f3   :  { %v302_v44 = vmul.f32 %v867_v38, %v291_v35  ;;  %v462_v14 = vsub.f32 1.0, %v867_v38 }
 0x1f4   :  { %v869_v39 = vpop.eup %623 }
 0x1f5   :  { %v305_v42 = vmul.f32 %v869_v39, %v297_v37  ;;  %v466_v16 = vmul.f32 %v462_v14, %v843_v9  ;;  %v465_v9 = vsub.f32 1.0, %v869_v39 }
 0x1f6   :  { %v873_v43 = vpop.eup %625 }
 0x1f7   :  { %v307_v45 = vpack.c.bf16 %v305_v42, %v304_v41  ;;  %v303_v46 = vmul.f32 %v873_v43, %v293_v40  ;;  %v463_v19 = vsub.f32 1.0, %v873_v43 }
 0x1f9   :  { %v306_v47 = vpack.c.bf16 %v303_v46, %v302_v44  ;;  %312 = vrot.lane.b32.xlu0 %v307_v45, %s773_s4  ;;  %v467_v25 = vmul.f32 %v463_v19, %v849_v11 }
 0x1fb   :  { %310 = vrot.lane.b32.xlu1 %v306_v47, %s773_s4 }
 0x26b   :  { %v313_v48 = vpop.permute.xlu0 %312 }
 0x26c   :  { %573 = vmatprep.subr.bf16.mxu0 %v313_v48 }
 0x26d   :  { %574 = vmatpush3.bf16.msra.mxu0 %v313_v48  ;;  %v311_v49 = vpop.permute.xlu1 %310 }
 0x26e   :  { %575 = vmatprep.subr.bf16.mxu0 %v311_v49 }
 0x271   :  { %576 = vmatpush3.bf16.msra.mxu0 %v311_v49 }
 0x274   :  { %578 = vmatmul.mubr.msk.bf16.vlgmr.msra.gmra.mxu0 %vm124_vm0, %v836_v4 }
 0x334   :  { %v579_v52 = vpop.f32.mrf.mxu0 }
 0x336   :  { %v350_v53 = vpop.f32.mrf.mxu0 }
 0x338   :  { %v580_v54 = vpop.f32.mrf.mxu0 }
 0x339   :  { %v366_v57 = vpack.c.bf16 %v580_v54, %v579_v52 }
 0x33a   :  { %v353_v55 = vpop.f32.mrf.mxu0 }
 0x33b   :  { %v365_v56 = vpack.c.bf16 %v353_v55, %v350_v53 }
 0x33d   :  { %585 = vmatprep.mubr.msk.bf16.mxu1 %vm124_vm0, %v365_v56 }
 0x33e   :  { %586 = vmatmul.mubr.msk.bf16.vlgmr.msra.gmra.mxu1 %vm124_vm0, %v366_v57 }
 0x3fe   :  { %v587_v58 = vpop.f32.mrf.mxu1 }
 0x400   :  { %v423_v59 = vpop.f32.mrf.mxu1 }
 0x401   :  { %442 = vrot.lane.b32.xlu0 %v423_v59, %s768_s30 }
 0x402   :  { %v588_v60 = vpop.f32.mrf.mxu1 }
 0x404   :  { %v426_v61 = vpop.f32.mrf.mxu1 }
 0x405   :  { %446 = vrot.lane.b32.xlu0 %v587_v58, %s768_s30  ;;  %444 = vrot.lane.b32.xlu1 %v426_v61, %s768_s30 }
 0x409   :  { %448 = vrot.lane.b32.xlu1 %v588_v60, %s768_s30 }
 0x473   :  { %v443_v62 = vpop.permute.xlu0 %442 }
 0x474   :  { %v454_v63 = vadd.f32 %v443_v62, %v856_v20 }
 0x476   :  { %627 = vtanh.f32 %v454_v63 }
 0x477   :  { %v447_v0 = vpop.permute.xlu0 %446  ;;  %v445_v1 = vpop.permute.xlu1 %444 }
 0x478   :  { %v456_v2 = vadd.f32 %v853_v18, %v447_v0  ;;  %v455_v3 = vadd.f32 %v445_v1, %v862_v24  ;;  %v464_v18 = vsub.f32 1.0, %v865_v36 }
 0x47a   :  { %629 = vtanh.f32 %v456_v2 }
 0x47b   :  { %631 = vtanh.f32 %v455_v3  ;;  %v449_v4 = vpop.permute.xlu1 %448 }
 0x47c   :  { %v457_v5 = vadd.f32 %v859_v22, %v449_v4  ;;  %v468_v22 = vmul.f32 %v464_v18, %v841_v8  ;;  %v469_v8 = vmul.f32 %v465_v9, %v847_v10 }
 0x47e   :  { %633 = vtanh.f32 %v457_v5 }
 0x483   :  { %v628_v6 = vpop.eup %627 }
 0x484   :  { %474 = vrot.lane.b32.xlu0 %v628_v6, %s768_s30 }
 0x487   :  { %v630_v7 = vpop.eup %629 }
 0x488   :  { %v632_v12 = vpop.eup %631  ;;  %478 = vrot.lane.b32.xlu0 %v630_v7, %s768_s30 }
 0x489   :  { %476 = vrot.lane.b32.xlu1 %v632_v12, %s768_s30 }
 0x48b   :  { %v634_v13 = vpop.eup %633 }
 0x48d   :  { %480 = vrot.lane.b32.xlu1 %v634_v13, %s768_s30 }
 0x4f6   :  { %v475_v15 = vpop.permute.xlu0 %474 }
 0x4f7   :  { %v486_v17 = vmul.f32 %v867_v38, %v475_v15 }
 0x4f9   :  { %v490_v20 = vadd.f32 %v486_v17, %v466_v16 }
 0x4fa   :  { %v479_v21 = vpop.permute.xlu0 %478 }
 0x4fb   :  { %494 = vst.msk [vmem:[#allocation11] sm:$0xff] %vm124_vm0, %v490_v20  ;;  %v488_v23 = vmul.f32 %v865_v36, %v479_v21  ;;  %v477_v24 = vpop.permute.xlu1 %476 }
 0x4fc   :  { %v487_v26 = vmul.f32 %v873_v43, %v477_v24 }
 0x4fd   :  { %v492_v27 = vadd.f32 %v488_v23, %v468_v22 }
 0x4fe   :  { %v491_v28 = vadd.f32 %v487_v26, %v467_v25 }
 0x4ff   :  { %496 = vst.msk [vmem:[#allocation11 + $0x10] sm:$0xff] %vm124_vm0, %v492_v27  ;;  %v481_v29 = vpop.permute.xlu1 %480 }
 0x500   :  { %495 = vst.msk [vmem:[#allocation11 + $0x8] sm:$0xff] %vm124_vm0, %v491_v28  ;;  %v489_v30 = vmul.f32 %v869_v39, %v481_v29 }
 0x502   :  { %v493_v31 = vadd.f32 %v489_v30, %v469_v8 }
 0x504   :  { %497 = vst.msk [vmem:[#allocation11 + $0x18] sm:$0xff] %vm124_vm0, %v493_v31 }
 0x505   :  { %746 = shalt.err (!%p743_p1)
}
 0x506   :  { %509 = dma.vmem_to_hbm [thread:$0]  %s504_s20, 512, %s920_s5, [#allocation4], %s764_s21, %s764_s21, %s765_s22  }
 0x507   :  { %761 = dma.done.wait [#allocation4], 512  }
 0x508   :  { %762 = vsyncadd [#allocation4], 4294966784 }
 0x509   :  { %513 = vsyncpa [#allocation3], 1 }
 0x50a   :  { %514 = vsyncpa [#allocation6], 1 }
 0x50b   :  { %515 = vsyncpa [#allocation9], 1 }
 0x50c   :  { %516 = vsyncpa [#allocation4], 1 }

</bundles_post_ra>
